<compile_context>
chip_gen: v5e
topology: v5e:2x2
jax: 0.10.0
libtpu: 0.0.40
codegen_flags: <defaults>
</compile_context>

<pallas_src>
from functools import partial

import jax
import jax.numpy as jnp
from jax.experimental import pallas as pl
from jax.experimental.pallas import tpu as pltpu

_NEG_BIG = jnp.float32(-1e30)
_VMEM_LIMIT = 48 * 1024 * 1024   # fits v7x's 64 MiB physical VMEM with headroom


def _round_up(x, m):
    return ((x + m - 1) // m) * m


# ---------------------------------------------------------------------------
# Kernel 1: tiled multi-output linear  y_i = x @ W_i + b_i   (W_i: (in, out) bf16)
#   grid = (row_blocks, col_blocks); bf16 MXU operands, f32 accumulation.
# ---------------------------------------------------------------------------
def _multi_linear_kernel(n_out, x_ref, *refs):
    w_refs = refs[:n_out]
    b_refs = refs[n_out:2 * n_out]
    o_refs = refs[2 * n_out:]
    x = x_ref[...].astype(jnp.bfloat16)
    for w_ref, b_ref, o_ref in zip(w_refs, b_refs, o_refs):
        acc = jnp.dot(x, w_ref[...], preferred_element_type=jnp.float32)
        o_ref[...] = (acc + b_ref[...]).astype(o_ref.dtype)


def pallas_multi_linear(x2d, weights, biases, out_dtype, *,
                        block_rows=512, block_cols=1024,
                        vmem_limit_bytes=_VMEM_LIMIT):
    """y_i = x2d @ weights[i] + biases[i]; weights pre-transposed (in, out)."""
    n, din = x2d.shape
    n_out = len(weights)
    dout = weights[0].shape[1]
    for w in weights:
        assert w.shape == (din, dout)

    bm = n if n <= block_rows else block_rows
    n_pad = _round_up(n, bm)
    if n_pad != n:
        x2d = jnp.pad(x2d, ((0, n_pad - n), (0, 0)))
    bn = block_cols if (dout > block_cols and dout % block_cols == 0) else dout

    in_specs = [pl.BlockSpec((bm, din), lambda i, j: (i, 0))]
    in_specs += [pl.BlockSpec((din, bn), lambda i, j: (0, j)) for _ in range(n_out)]
    in_specs += [pl.BlockSpec((1, bn), lambda i, j: (0, j)) for _ in range(n_out)]
    out_specs = tuple(pl.BlockSpec((bm, bn), lambda i, j: (i, j))
                      for _ in range(n_out))
    out_shape = tuple(jax.ShapeDtypeStruct((n_pad, dout), out_dtype)
                      for _ in range(n_out))

    outs = pl.pallas_call(
        partial(_multi_linear_kernel, n_out),
        out_shape=out_shape,
        grid_spec=pltpu.PrefetchScalarGridSpec(
            num_scalar_prefetch=0,
            grid=(n_pad // bm, dout // bn),
            in_specs=in_specs,
            out_specs=out_specs,
        ),
        compiler_params=pltpu.CompilerParams(
            dimension_semantics=("parallel", "parallel"),
            vmem_limit_bytes=vmem_limit_bytes),
    )(x2d, *weights, *biases)
    if not isinstance(outs, (list, tuple)):
        outs = (outs,)
    if n_pad != n:
        outs = tuple(o[:n] for o in outs)
    return tuple(outs)


# ---------------------------------------------------------------------------
# Kernel 2a: flash-style attention (need_weights=False).
#   grid = (B, num_q_blocks, num_kv_blocks); all H heads of one batch per step.
#   Q is pre-scaled (scaling folded into the projection); K is (B, H, Dh, S).
# ---------------------------------------------------------------------------
def _flash_attn_kernel(has_ab, has_kb, *args):
    q_ref, k_ref, v_ref = args[:3]
    idx = 3
    ab_ref = kb_ref = None
    if has_ab:
        ab_ref = args[idx]
        idx += 1
    if has_kb:
        kb_ref = args[idx]
        idx += 1
    o_ref = args[idx]
    m_sc, l_sc, acc_sc = args[idx + 1:idx + 4]

    kv = pl.program_id(2)

    @pl.when(kv == 0)
    def _():
        m_sc[...] = jnp.full(m_sc.shape, -jnp.inf, m_sc.dtype)
        l_sc[...] = jnp.zeros(l_sc.shape, l_sc.dtype)
        acc_sc[...] = jnp.zeros(acc_sc.shape, acc_sc.dtype)

    q = q_ref[0]                                           # (H, Tq, Dh) bf16
    k = k_ref[0]                                           # (H, Dh, Sb) bf16
    s = jnp.einsum("htd,hds->hts", q, k,
                   preferred_element_type=jnp.float32)     # (H, Tq, Sb) f32
    if has_ab:
        s = s + ab_ref[...].astype(jnp.float32)            # (Tq, Sb) bf16 bias
    if has_kb:
        s = s + kb_ref[0]                                  # (1, Sb) f32 bias

    m_prev = m_sc[...]
    m_new = jnp.maximum(m_prev, jnp.max(s, axis=-1, keepdims=True))  # (H, Tq, 1)
    alpha = jnp.exp(m_prev - m_new)
    p = jnp.exp(s - m_new)
    l_sc[...] = alpha * l_sc[...] + jnp.sum(p, axis=-1, keepdims=True)
    acc_sc[...] = alpha * acc_sc[...] + jnp.einsum(
        "hts,hsd->htd", p.astype(v_ref.dtype), v_ref[0],
        preferred_element_type=jnp.float32)
    m_sc[...] = m_new

    @pl.when(kv == pl.num_programs(2) - 1)
    def _():
        o_ref[0] = (acc_sc[...] *
                    pl.reciprocal(l_sc[...], approx=True)).astype(o_ref.dtype)


def flash_attention(q, k, v, attn_bias, kpm_bias, *, tq, sb,
                    vmem_limit_bytes=_VMEM_LIMIT):
    """q: (B,H,T,Dh); k: (B,H,Dh,S); v: (B,H,S,Dh); biases optional (may be None)."""
    B, H, T, Dh = q.shape
    S = k.shape[3]
    assert T % tq == 0 and S % sb == 0
    has_ab = attn_bias is not None
    has_kb = kpm_bias is not None

    in_specs = [
        pl.BlockSpec((1, H, tq, Dh), lambda b, qi, kv: (b, 0, qi, 0)),
        pl.BlockSpec((1, H, Dh, sb), lambda b, qi, kv: (b, 0, 0, kv)),
        pl.BlockSpec((1, H, sb, Dh), lambda b, qi, kv: (b, 0, kv, 0)),
    ]
    inputs = [q, k, v]
    if has_ab:
        in_specs.append(pl.BlockSpec((tq, sb), lambda b, qi, kv: (qi, kv)))
        inputs.append(attn_bias)
    if has_kb:
        in_specs.append(pl.BlockSpec((1, 1, sb), lambda b, qi, kv: (b, 0, kv)))
        inputs.append(kpm_bias)

    return pl.pallas_call(
        partial(_flash_attn_kernel, has_ab, has_kb),
        out_shape=jax.ShapeDtypeStruct((B, H, T, Dh), q.dtype),
        grid_spec=pltpu.PrefetchScalarGridSpec(
            num_scalar_prefetch=0,
            grid=(B, T // tq, S // sb),
            in_specs=in_specs,
            out_specs=pl.BlockSpec((1, H, tq, Dh), lambda b, qi, kv: (b, 0, qi, 0)),
            scratch_shapes=[
                pltpu.VMEM((H, tq, 1), jnp.float32),    # running max
                pltpu.VMEM((H, tq, 1), jnp.float32),    # running denominator
                pltpu.VMEM((H, tq, Dh), jnp.float32),   # running numerator
            ],
        ),
        compiler_params=pltpu.CompilerParams(
            dimension_semantics=("parallel", "parallel", "arbitrary"),
            vmem_limit_bytes=vmem_limit_bytes),
    )(*inputs)


# ---------------------------------------------------------------------------
# Kernel 2b: attention + head-mean softmax weights (need_weights=True path).
#   grid = (B, num_q_blocks); full (padded) S resident per step.
# ---------------------------------------------------------------------------
def _attn_weights_kernel(has_ab, has_kb, *args):
    q_ref, k_ref, v_ref = args[:3]
    idx = 3
    ab_ref = kb_ref = None
    if has_ab:
        ab_ref = args[idx]
        idx += 1
    if has_kb:
        kb_ref = args[idx]
        idx += 1
    o_ref, w_ref = args[idx], args[idx + 1]

    q = q_ref[0]                                           # (H, Tq, Dh) bf16
    k = k_ref[0]                                           # (H, Dh, S)  bf16
    s = jnp.einsum("htd,hds->hts", q, k, preferred_element_type=jnp.float32)
    if has_ab:
        s = s + ab_ref[...].astype(jnp.float32)
    if has_kb:
        s = s + kb_ref[0]
    m = jnp.max(s, axis=-1, keepdims=True)
    e = jnp.exp(s - m)
    l = jnp.sum(e, axis=-1, keepdims=True)
    p = e * pl.reciprocal(l, approx=True)                  # (H, Tq, S)
    w_ref[0] = jnp.mean(p, axis=0).astype(w_ref.dtype)     # head-mean in-kernel
    o_ref[0] = jnp.einsum("hts,hsd->htd", p.astype(v_ref.dtype), v_ref[0],
                          preferred_element_type=jnp.float32).astype(o_ref.dtype)


def attention_with_weights(q, k, v, attn_bias, kpm_bias, *, tq,
                           vmem_limit_bytes=_VMEM_LIMIT):
    # TODO(synk): for very long S this path should also tile over kv blocks
    # (two-pass softmax); the common need_weights=False path already does.
    B, H, T, Dh = q.shape
    S = k.shape[3]
    assert T % tq == 0
    has_ab = attn_bias is not None
    has_kb = kpm_bias is not None

    in_specs = [
        pl.BlockSpec((1, H, tq, Dh), lambda b, qi: (b, 0, qi, 0)),
        pl.BlockSpec((1, H, Dh, S), lambda b, qi: (b, 0, 0, 0)),
        pl.BlockSpec((1, H, S, Dh), lambda b, qi: (b, 0, 0, 0)),
    ]
    inputs = [q, k, v]
    if has_ab:
        in_specs.append(pl.BlockSpec((tq, S), lambda b, qi: (qi, 0)))
        inputs.append(attn_bias)
    if has_kb:
        in_specs.append(pl.BlockSpec((1, 1, S), lambda b, qi: (b, 0, 0)))
        inputs.append(kpm_bias)

    return pl.pallas_call(
        partial(_attn_weights_kernel, has_ab, has_kb),
        out_shape=(
            jax.ShapeDtypeStruct((B, H, T, Dh), q.dtype),
            jax.ShapeDtypeStruct((B, T, S), jnp.float32),
        ),
        grid_spec=pltpu.PrefetchScalarGridSpec(
            num_scalar_prefetch=0,
            grid=(B, T // tq),
            in_specs=in_specs,
            out_specs=(
                pl.BlockSpec((1, H, tq, Dh), lambda b, qi: (b, 0, qi, 0)),
                pl.BlockSpec((1, tq, S), lambda b, qi: (b, qi, 0)),
            ),
        ),
        compiler_params=pltpu.CompilerParams(
            dimension_semantics=("parallel", "parallel"),
            vmem_limit_bytes=vmem_limit_bytes),
    )(*inputs)


# ---------------------------------------------------------------------------
# Module wrapper (parameter setup + reshapes are plain JAX "glue").
# ---------------------------------------------------------------------------
class MultiheadAttentionPallas:
    def __init__(self, embed_dim, num_heads, key, dropout=0.0, weights_dropout=True,
                 block_q=256, block_s=512, proj_block_rows=512, proj_block_cols=1024):
        self.embed_dim = embed_dim
        self.num_heads = num_heads
        self.head_dim = embed_dim // num_heads
        assert self.head_dim * num_heads == embed_dim, \
            "embed_dim must be divisible by num_heads"
        self.scaling = self.head_dim ** (-0.5)
        self.weights_dropout = weights_dropout
        self.dropout_p = dropout
        # TODO(synk): dropout is identity for p=0.0 (module default); nonzero
        # (training-mode) dropout is not implemented in the kernels.

        assert block_q % 8 == 0 and block_s % 128 == 0
        assert proj_block_rows % 8 == 0 and proj_block_cols % 128 == 0
        self.block_q = block_q
        self.block_s = block_s
        self.proj_block_rows = proj_block_rows
        self.proj_block_cols = proj_block_cols

        k1, k2 = jax.random.split(key)
        E = embed_dim
        # reset_parameters(): normal(std=0.02) weights, zero biases (PyTorch layout)
        self.in_proj_weight = 0.02 * jax.random.normal(k1, (3 * E, E), jnp.float32)
        self.in_proj_bias = jnp.zeros((3 * E,), jnp.float32)
        self.out_proj_weight = 0.02 * jax.random.normal(k2, (E, E), jnp.float32)
        self.out_proj_bias = jnp.zeros((E,), jnp.float32)

        # Pre-transposed (in, out), bf16 kernel weights, built ONCE.  The
        # attention scaling is folded into the Q projection (weight and bias).
        wq = self.in_proj_weight[:E]
        wk = self.in_proj_weight[E:2 * E]
        wv = self.in_proj_weight[2 * E:]
        self.wq_t = (wq.T * self.scaling).astype(jnp.bfloat16)     # (E, E)
        self.wk_t = wk.T.astype(jnp.bfloat16)
        self.wv_t = wv.T.astype(jnp.bfloat16)
        self.w_out_t = self.out_proj_weight.T.astype(jnp.bfloat16)
        self.bq = (self.in_proj_bias[:E] * self.scaling).reshape(1, E)   # f32 biases
        self.bk = self.in_proj_bias[E:2 * E].reshape(1, E)
        self.bv = self.in_proj_bias[2 * E:].reshape(1, E)
        self.b_out = self.out_proj_bias.reshape(1, E)

    def __call__(self, query, key, value, key_padding_mask=None,
                 attn_mask=None, need_weights=False):
        T, B, E = query.shape
        assert key.shape == value.shape
        S = key.shape[0]
        H, Dh = self.num_heads, self.head_dim

        # object identity stands in for torch's data_ptr() equality checks
        qkv_same = (query is key) and (key is value)
        kv_same = key is value

        lin = partial(pallas_multi_linear,
                      block_rows=self.proj_block_rows,
                      block_cols=self.proj_block_cols)

        if qkv_same:
            # fused QKV: activations read from HBM once, three dots per tile
            q2, k2, v2 = lin(query.reshape(T * B, E),
                             [self.wq_t, self.wk_t, self.wv_t],
                             [self.bq, self.bk, self.bv], jnp.bfloat16)
        elif kv_same:
            (q2,) = lin(query.reshape(T * B, E), [self.wq_t], [self.bq], jnp.bfloat16)
            k2, v2 = lin(key.reshape(S * B, E), [self.wk_t, self.wv_t],
                         [self.bk, self.bv], jnp.bfloat16)
        else:
            (q2,) = lin(query.reshape(T * B, E), [self.wq_t], [self.bq], jnp.bfloat16)
            (k2,) = lin(key.reshape(S * B, E), [self.wk_t], [self.bk], jnp.bfloat16)
            (v2,) = lin(value.reshape(S * B, E), [self.wv_t], [self.bv], jnp.bfloat16)

        # (T, B, E) -> head-major layouts (bf16 halves the transpose bytes).
        # TODO(synk): fuse the head-major layout into the projection / attention
        # kernels so these XLA transposes (HBM round trips) disappear entirely.
        q_bh = q2.reshape(T, B, H, Dh).transpose(1, 2, 0, 3)      # (B, H, T, Dh)
        k_bh = k2.reshape(S, B, H, Dh).transpose(1, 2, 3, 0)      # (B, H, Dh, S)
        v_bh = v2.reshape(S, B, H, Dh).transpose(1, 2, 0, 3)      # (B, H, S, Dh)

        # block sizes + padding so block shapes always satisfy the (8,128) rule
        tq = T if T <= self.block_q else self.block_q
        sb = S if S <= self.block_s else self.block_s
        T_pad = _round_up(T, tq)
        S_pad = _round_up(S, sb)
        if T_pad != T:
            q_bh = jnp.pad(q_bh, ((0, 0), (0, 0), (0, T_pad - T), (0, 0)))
        if S_pad != S:
            k_bh = jnp.pad(k_bh, ((0, 0), (0, 0), (0, 0), (0, S_pad - S)))
            v_bh = jnp.pad(v_bh, ((0, 0), (0, 0), (0, S_pad - S), (0, 0)))

        # statically-optional additive mask biases (nothing streamed when absent)
        attn_bias = None
        if attn_mask is not None:
            attn_bias = jnp.where(attn_mask, _NEG_BIG, 0.0).astype(jnp.bfloat16)
            if (T_pad, S_pad) != (T, S):
                attn_bias = jnp.pad(attn_bias, ((0, T_pad - T), (0, S_pad - S)))
        col_bias = None
        if key_padding_mask is not None or S_pad != S:
            if key_padding_mask is not None:
                col_bias = jnp.where(key_padding_mask.T, _NEG_BIG,
                                     0.0).astype(jnp.float32)          # (B, S)
            else:
                col_bias = jnp.zeros((B, S), jnp.float32)
            if S_pad != S:
                col_bias = jnp.pad(col_bias, ((0, 0), (0, S_pad - S)),
                                   constant_values=-1e30)
            col_bias = col_bias.reshape(B, 1, S_pad)

        if need_weights:
            attn_bh, w = attention_with_weights(q_bh, k_bh, v_bh,
                                                attn_bias, col_bias, tq=tq)
            attn_weights = w[:, :T, :S].transpose(1, 0, 2)             # (T, B, S)
        else:
            attn_bh = flash_attention(q_bh, k_bh, v_bh, attn_bias, col_bias,
                                      tq=tq, sb=sb)
            attn_weights = None

        # (B, H, T, Dh) -> (T*B, E) -> out-projection -> (T, B, E)
        attn2 = attn_bh[:, :, :T, :].transpose(2, 0, 1, 3).reshape(T * B, E)
        (out,) = lin(attn2, [self.w_out_t], [self.b_out], query.dtype)
        return out.reshape(T, B, E), attn_weights


# ---------------------------------------------------------------------------
# Pure-JAX (f32) reference for verification.
# ---------------------------------------------------------------------------
def reference_mha(mod, query, key, value, key_padding_mask=None, attn_mask=None):
    T, B, E = query.shape
    S = key.shape[0]
    H, Dh = mod.num_heads, mod.head_dim

    def proj(x, s, e):
        return x @ mod.in_proj_weight[s:e].T + mod.in_proj_bias[s:e]

    q = proj(query, 0, E) * mod.scaling
    k = proj(key, E, 2 * E)
    v = proj(value, 2 * E, 3 * E)
    q = q.reshape(T, B * H, Dh).transpose(1, 0, 2)
    k = k.reshape(S, B * H, Dh).transpose(1, 0, 2)
    v = v.reshape(S, B * H, Dh).transpose(1, 0, 2)
    s = jnp.einsum("btd,bsd->bts", q, k)
    if attn_mask is not None:
        s = jnp.where(attn_mask[None], -jnp.inf, s)
    if key_padding_mask is not None:
        s = s.reshape(B, H, T, S)
        s = jnp.where(key_padding_mask.T[:, None, None, :], -jnp.inf, s)
        s = s.reshape(B * H, T, S)
    p = jax.nn.softmax(s, axis=-1)
    a = jnp.einsum("bts,bsd->btd", p, v)
    a = a.transpose(1, 0, 2).reshape(T, B, E)
    out = a @ mod.out_proj_weight.T + mod.out_proj_bias
    w = p.reshape(B, H, T, S).mean(axis=1).transpose(1, 0, 2)
    return out, w


if __name__ == "__main__":
    root = jax.random.PRNGKey(0)
    (k_param, k_x, k_q2, k_k2, k_v2,
     k_param3, k_q3, k_kv3) = jax.random.split(root, 8)

    # ---- test 1: self-attention (fused QKV path), causal + key padding,
    #              both the flash and the need_weights kernels (no padding path).
    T1, S1, B1, E1, H1 = 8, 8, 2, 32, 4
    mha = MultiheadAttentionPallas(E1, H1, k_param)
    x = jax.random.normal(k_x, (T1, B1, E1), jnp.float32)
    kpm = jnp.zeros((S1, B1), bool).at[-2:, 1].set(True)
    causal = jnp.triu(jnp.ones((T1, S1), bool), k=1)

    out_w, w = mha(x, x, x, key_padding_mask=kpm, attn_mask=causal, need_weights=True)
    out_f, _ = mha(x, x, x, key_padding_mask=kpm, attn_mask=causal, need_weights=False)
    out_w, out_f, w = jax.block_until_ready((out_w, out_f, w))
    ref_out, ref_w = reference_mha(mha, x, x, x, key_padding_mask=kpm, attn_mask=causal)
    assert out_w.shape == (T1, B1, E1) and w.shape == (T1, B1, S1)
    assert jnp.allclose(out_w, ref_out, atol=3e-3, rtol=3e-2), "weights-path attn mismatch"
    assert jnp.allclose(out_f, ref_out, atol=3e-3, rtol=3e-2), "flash-path attn mismatch"
    assert jnp.allclose(w, ref_w, atol=5e-3, rtol=5e-2), "attn_weights mismatch"

    # ---- test 2: cross-attention with distinct key/value arrays (separate-proj path)
    S2 = 16
    xq = jax.random.normal(k_q2, (T1, B1, E1), jnp.float32)
    xk = jax.random.normal(k_k2, (S2, B1, E1), jnp.float32)
    xv = jax.random.normal(k_v2, (S2, B1, E1), jnp.float32)
    kpm2 = jnp.zeros((S2, B1), bool).at[-3:, 0].set(True)
    out2, _ = mha(xq, xk, xv, key_padding_mask=kpm2, need_weights=False)
    out2 = jax.block_until_ready(out2)
    ref2, _ = reference_mha(mha, xq, xk, xv, key_padding_mask=kpm2)
    assert jnp.allclose(out2, ref2, atol=3e-3, rtol=3e-2), "cross-attention mismatch"

    # ---- test 3: kv_same path with small blocks -> exercises q/kv tiling (online
    #              softmax across 2 kv blocks), T/S padding and row-padded projections.
    T3, S3 = 136, 200
    mha3 = MultiheadAttentionPallas(E1, H1, k_param3, block_q=128, block_s=128,
                                    proj_block_rows=128)
    xq3 = jax.random.normal(k_q3, (T3, B1, E1), jnp.float32)
    xkv3 = jax.random.normal(k_kv3, (S3, B1, E1), jnp.float32)
    kpm3 = jnp.zeros((S3, B1), bool).at[-5:, 1].set(True)
    mask3 = jnp.triu(jnp.ones((T3, S3), bool), k=1)
    out3f, _ = mha3(xq3, xkv3, xkv3, key_padding_mask=kpm3, attn_mask=mask3,
                    need_weights=False)
    out3w, w3 = mha3(xq3, xkv3, xkv3, key_padding_mask=kpm3, attn_mask=mask3,
                     need_weights=True)
    out3f, out3w, w3 = jax.block_until_ready((out3f, out3w, w3))
    ref3, ref_w3 = reference_mha(mha3, xq3, xkv3, xkv3, key_padding_mask=kpm3,
                                 attn_mask=mask3)
    assert out3f.shape == (T3, B1, E1) and w3.shape == (T3, B1, S3)
    assert jnp.allclose(out3f, ref3, atol=3e-3, rtol=3e-2), "tiled flash mismatch"
    assert jnp.allclose(out3w, ref3, atol=3e-3, rtol=3e-2), "tiled weights-path mismatch"
    assert jnp.allclose(w3, ref_w3, atol=5e-3, rtol=5e-2), "tiled attn_weights mismatch"

    print("KERNEL_OK")
</pallas_src>

<mosaic_0001>
module attributes {stable_mosaic.version = 11 : i64} {
  func.func @_multi_linear_kernel(%arg0: i32, %arg1: i32, %arg2: memref<16x32xf32, #tpu.memory_space<vmem>>, %arg3: memref<32x32xbf16, #tpu.memory_space<vmem>>, %arg4: memref<32x32xbf16, #tpu.memory_space<vmem>>, %arg5: memref<32x32xbf16, #tpu.memory_space<vmem>>, %arg6: memref<1x32xf32, #tpu.memory_space<vmem>>, %arg7: memref<1x32xf32, #tpu.memory_space<vmem>>, %arg8: memref<1x32xf32, #tpu.memory_space<vmem>>, %arg9: memref<16x32xbf16, #tpu.memory_space<vmem>>, %arg10: memref<16x32xbf16, #tpu.memory_space<vmem>>, %arg11: memref<16x32xbf16, #tpu.memory_space<vmem>>) attributes {dimension_semantics = [#tpu.dimension_semantics<parallel>, #tpu.dimension_semantics<parallel>], iteration_bounds = array<i64: 1, 1>, scalar_prefetch = 0 : i64, scratch_operands = 0 : i64, tpu.core_type = #tpu.core_type<tc>, window_params = [{transform_indices = @transform_0, window_bounds = array<i64: 16, 32>}, {transform_indices = @transform_1, window_bounds = array<i64: 32, 32>}, {transform_indices = @transform_2, window_bounds = array<i64: 32, 32>}, {transform_indices = @transform_3, window_bounds = array<i64: 32, 32>}, {transform_indices = @transform_4, window_bounds = array<i64: 1, 32>}, {transform_indices = @transform_5, window_bounds = array<i64: 1, 32>}, {transform_indices = @transform_6, window_bounds = array<i64: 1, 32>}, {transform_indices = @transform_7, window_bounds = array<i64: 16, 32>}, {transform_indices = @transform_8, window_bounds = array<i64: 16, 32>}, {transform_indices = @transform_9, window_bounds = array<i64: 16, 32>}]} {
    %c0 = arith.constant 0 : index
    %c0_0 = arith.constant 0 : index
    %0 = vector.load %arg2[%c0, %c0_0] : memref<16x32xf32, #tpu.memory_space<vmem>>, vector<16x32xf32>
    %1 = arith.truncf %0 : vector<16x32xf32> to vector<16x32xbf16>
    %c0_1 = arith.constant 0 : index
    %c0_2 = arith.constant 0 : index
    %2 = vector.load %arg3[%c0_1, %c0_2] : memref<32x32xbf16, #tpu.memory_space<vmem>>, vector<32x32xbf16>
    %cst = arith.constant dense<0.000000e+00> : vector<16x32xf32>
    %3 = tpu.matmul %1, %2, %cst {dimension_numbers = #tpu.dot_dimension_numbers<[1], [0], [0], [1], [0, 0, 1, 1], [], []>} : vector<16x32xbf16>, vector<32x32xbf16>, vector<16x32xf32> -> vector<16x32xf32>
    %c0_3 = arith.constant 0 : index
    %c0_4 = arith.constant 0 : index
    %4 = vector.load %arg6[%c0_3, %c0_4] : memref<1x32xf32, #tpu.memory_space<vmem>>, vector<1x32xf32>
    %5 = vector.broadcast %4 : vector<1x32xf32> to vector<16x32xf32>
    %6 = arith.addf %3, %5 : vector<16x32xf32>
    %7 = arith.truncf %6 : vector<16x32xf32> to vector<16x32xbf16>
    %c0_5 = arith.constant 0 : index
    %c0_6 = arith.constant 0 : index
    %8 = vector.load %arg9[%c0_5, %c0_6] : memref<16x32xbf16, #tpu.memory_space<vmem>>, vector<16x32xbf16>
    tpu.vector_store %arg9[%c0_5, %c0_6], %7 {strides = array<i32>} : memref<16x32xbf16, #tpu.memory_space<vmem>>, vector<16x32xbf16>,
    %c0_7 = arith.constant 0 : index
    %c0_8 = arith.constant 0 : index
    %9 = vector.load %arg4[%c0_7, %c0_8] : memref<32x32xbf16, #tpu.memory_space<vmem>>, vector<32x32xbf16>
    %cst_9 = arith.constant dense<0.000000e+00> : vector<16x32xf32>
    %10 = tpu.matmul %1, %9, %cst_9 {dimension_numbers = #tpu.dot_dimension_numbers<[1], [0], [0], [1], [0, 0, 1, 1], [], []>} : vector<16x32xbf16>, vector<32x32xbf16>, vector<16x32xf32> -> vector<16x32xf32>
    %c0_10 = arith.constant 0 : index
    %c0_11 = arith.constant 0 : index
    %11 = vector.load %arg7[%c0_10, %c0_11] : memref<1x32xf32, #tpu.memory_space<vmem>>, vector<1x32xf32>
    %12 = vector.broadcast %11 : vector<1x32xf32> to vector<16x32xf32>
    %13 = arith.addf %10, %12 : vector<16x32xf32>
    %14 = arith.truncf %13 : vector<16x32xf32> to vector<16x32xbf16>
    %c0_12 = arith.constant 0 : index
    %c0_13 = arith.constant 0 : index
    %15 = vector.load %arg10[%c0_12, %c0_13] : memref<16x32xbf16, #tpu.memory_space<vmem>>, vector<16x32xbf16>
    tpu.vector_store %arg10[%c0_12, %c0_13], %14 {strides = array<i32>} : memref<16x32xbf16, #tpu.memory_space<vmem>>, vector<16x32xbf16>,
    %c0_14 = arith.constant 0 : index
    %c0_15 = arith.constant 0 : index
    %16 = vector.load %arg5[%c0_14, %c0_15] : memref<32x32xbf16, #tpu.memory_space<vmem>>, vector<32x32xbf16>
    %cst_16 = arith.constant dense<0.000000e+00> : vector<16x32xf32>
    %17 = tpu.matmul %1, %16, %cst_16 {dimension_numbers = #tpu.dot_dimension_numbers<[1], [0], [0], [1], [0, 0, 1, 1], [], []>} : vector<16x32xbf16>, vector<32x32xbf16>, vector<16x32xf32> -> vector<16x32xf32>
    %c0_17 = arith.constant 0 : index
    %c0_18 = arith.constant 0 : index
    %18 = vector.load %arg8[%c0_17, %c0_18] : memref<1x32xf32, #tpu.memory_space<vmem>>, vector<1x32xf32>
    %19 = vector.broadcast %18 : vector<1x32xf32> to vector<16x32xf32>
    %20 = arith.addf %17, %19 : vector<16x32xf32>
    %21 = arith.truncf %20 : vector<16x32xf32> to vector<16x32xbf16>
    %c0_19 = arith.constant 0 : index
    %c0_20 = arith.constant 0 : index
    %22 = vector.load %arg11[%c0_19, %c0_20] : memref<16x32xbf16, #tpu.memory_space<vmem>>, vector<16x32xbf16>
    tpu.vector_store %arg11[%c0_19, %c0_20], %21 {strides = array<i32>} : memref<16x32xbf16, #tpu.memory_space<vmem>>, vector<16x32xbf16>,
    return
  }
  func.func @transform_0(%arg0: i32, %arg1: i32) -> (i32, i32) {
    %c0_i32 = arith.constant 0 : i32
    %c0_i32_0 = arith.constant 0 : i32
    return %arg0, %c0_i32 : i32, i32
  }
  func.func @transform_1(%arg0: i32, %arg1: i32) -> (i32, i32) {
    %c0_i32 = arith.constant 0 : i32
    %c0_i32_0 = arith.constant 0 : i32
    return %c0_i32, %arg1 : i32, i32
  }
  func.func @transform_2(%arg0: i32, %arg1: i32) -> (i32, i32) {
    %c0_i32 = arith.constant 0 : i32
    %c0_i32_0 = arith.constant 0 : i32
    return %c0_i32, %arg1 : i32, i32
  }
  func.func @transform_3(%arg0: i32, %arg1: i32) -> (i32, i32) {
    %c0_i32 = arith.constant 0 : i32
    %c0_i32_0 = arith.constant 0 : i32
    return %c0_i32, %arg1 : i32, i32
  }
  func.func @transform_4(%arg0: i32, %arg1: i32) -> (i32, i32) {
    %c0_i32 = arith.constant 0 : i32
    %c0_i32_0 = arith.constant 0 : i32
    return %c0_i32, %arg1 : i32, i32
  }
  func.func @transform_5(%arg0: i32, %arg1: i32) -> (i32, i32) {
    %c0_i32 = arith.constant 0 : i32
    %c0_i32_0 = arith.constant 0 : i32
    return %c0_i32, %arg1 : i32, i32
  }
  func.func @transform_6(%arg0: i32, %arg1: i32) -> (i32, i32) {
    %c0_i32 = arith.constant 0 : i32
    %c0_i32_0 = arith.constant 0 : i32
    return %c0_i32, %arg1 : i32, i32
  }
  func.func @transform_7(%arg0: i32, %arg1: i32) -> (i32, i32) {
    %c0_i32 = arith.constant 0 : i32
    return %arg0, %arg1 : i32, i32
  }
  func.func @transform_8(%arg0: i32, %arg1: i32) -> (i32, i32) {
    %c0_i32 = arith.constant 0 : i32
    return %arg0, %arg1 : i32, i32
  }
  func.func @transform_9(%arg0: i32, %arg1: i32) -> (i32, i32) {
    %c0_i32 = arith.constant 0 : i32
    return %arg0, %arg1 : i32, i32
  }
}

</mosaic_0001>

<bundles_post_ra>
// kernel: tpu_custom_call.1
= control target key start
LH: loop header
LB: loop body
LE: loop exit
PB: predicated region body
PF: predicated region fallthrough
CT: control target
= control target key end

     0   :  { %15 = vsyncpa [#allocation3], 0  ;;  %s613_s0 = inlined_call_operand.hbm [shape: f32[16,32], index: 0, kind: input, shape index: {}]   ;;  %s614_s1 = inlined_call_operand.hbm [shape: bf16[32,32], index: 1, kind: input, shape index: {}]   ;;  %s615_s2 = inlined_call_operand.hbm [shape: bf16[32,32], index: 2, kind: input, shape index: {}]   ;;  %s616_s3 = inlined_call_operand.hbm [shape: bf16[32,32], index: 3, kind: input, shape index: {}]   ;;  %s617_s4 = inlined_call_operand.vmem [shape: f32[1,32], index: 4, kind: input, shape index: {}]   ;;  %s618_s5 = inlined_call_operand.vmem [shape: f32[1,32], index: 5, kind: input, shape index: {}]   ;;  %s619_s6 = inlined_call_operand.vmem [shape: f32[1,32], index: 6, kind: input, shape index: {}]   ;;  %s620_s7 = inlined_call_operand.hbm [shape: bf16[16,32], index: 7, kind: output, shape index: {0}]   ;;  %s621_s8 = inlined_call_operand.hbm [shape: bf16[16,32], index: 8, kind: output, shape index: {1}]   ;;  %s622_s9 = inlined_call_operand.hbm [shape: bf16[16,32], index: 9, kind: output, shape index: {2}]  }
   0x1   :  { %16 = vsyncpa [#allocation6], 0 }
   0x2   :  { %17 = vsyncpa [#allocation9], 0 }
   0x3   :  { %18 = vsyncpa [#allocation4], 0  ;;  %s37_s11 = sshll.u32 %s614_s1, 4  ;;  %s38_s11 = int_to_ptr.hbm [resolvable:$true] %s37_s11 }
   0x4   :  { %19 = vsyncpa [#allocation12], 0  ;;  %s498_s12 = smov [#allocation5]   ;;  %s24_s16 = sshll.u32 %s613_s0, 4  ;;  %s25_s16 = int_to_ptr.hbm [resolvable:$true] %s24_s16 }
   0x5   :  { %s39_s13 = sshll.u32 %s498_s12, 4  ;;  %s499_s17 = smov 64   ;;  %s40_s13 = int_to_ptr.vmem [resolvable:$true] %s39_s13 }
   0x6   :  { %s500_s18 = smov 4   ;;  %s501_s19 = smov [#allocation2]  }
   0x7   :  { %45 = dma.hbm_to_vmem [thread:$0]  %s38_s11, 256, %s40_s13, [#allocation6], %s499_s17, %s499_s17, %s500_s18  }
   0x8   :  { %s26_s20 = sshll.u32 %s501_s19, 4  ;;  %s502_s1 = smov 128   ;;  %s27_s20 = int_to_ptr.vmem [resolvable:$true] %s26_s20 }
   0x9   :  { %s503_s21 = smov 8   ;;  %s50_s24 = sshll.u32 %s615_s2, 4  ;;  %s51_s24 = int_to_ptr.hbm [resolvable:$true] %s50_s24 }
   0xa   :  { %32 = dma.hbm_to_vmem [thread:$0]  %s25_s16, 256, %s27_s20, [#allocation3], %s502_s1, %s502_s1, %s503_s21  }
   0xb   :  { %s504_s25 = smov [#allocation7]   ;;  %s63_s28 = sshll.u32 %s616_s3, 4  ;;  %s64_s28 = int_to_ptr.hbm [resolvable:$true] %s63_s28 }
   0xc   :  { %s52_s0 = sshll.u32 %s504_s25, 4  ;;  %s505_s29 = smov [#allocation8]   ;;  %s53_s0 = int_to_ptr.vmem [resolvable:$true] %s52_s0 }
   0xd   :  { %58 = dma.hbm_to_vmem [thread:$0]  %s51_s24, 256, %s53_s0, [#allocation6], %s499_s17, %s499_s17, %s500_s18  }
   0xe   :  { %s65_s30 = sshll.u32 %s505_s29, 4  ;;  %s66_s30 = int_to_ptr.vmem [resolvable:$true] %s65_s30 }
   0xf   :  { %71 = dma.hbm_to_vmem [thread:$0]  %s64_s28, 256, %s66_s30, [#allocation9], %s499_s17, %s499_s17, %s500_s18  }
  0x10   :  { %488 = dma.done.wait [#allocation3], 256  }
  0x11   :  { %489 = vsyncadd [#allocation3], 4294967040 }
  0x12   :  { %490 = dma.done.wait [#allocation6], 512  }
  0x13   :  { %491 = vsyncadd [#allocation6], 4294966784 }
  0x14   :  { %492 = dma.done.wait [#allocation9], 256  }
  0x15   :  { %493 = vsyncadd [#allocation9], 4294967040  ;;  %v301_v0 = vld [vmem:[#allocation5 + $0x8] sm:$0xff]  ;;  %v303_v1 = vld [vmem:[#allocation7 + $0x8] sm:$0xff]  ;;  %vm118_vm0 = vcmask 261120   ;;  %vm138_vm1 = vcmask 257024  }
  0x16   :  { %v305_v2 = vld [vmem:[#allocation8 + $0x8] sm:$0xff]  ;;  %v300_v3 = vld [vmem:[#allocation5] sm:$0xff]  ;;  %v302_v4 = vld [vmem:[#allocation7] sm:$0xff]  ;;  %128 = vmatpush.bf16.msra.mxu0 %v301_v0  ;;  %167 = vmatpush.bf16.msra.mxu1 %v303_v1  ;;  %s223_s16 = sshll.u32 %s620_s7, 4  ;;  %s507_s19 = smov [#allocation11]   ;;  %s224_s16 = int_to_ptr.hbm [resolvable:$true] %s223_s16 }
  0x17   :  { %v95_v5 = vld [vmem:[#allocation2] sm:$0xff]  ;;  %v96_v6 = vld [vmem:[#allocation2 + $0x8] sm:$0xff]  ;;  %205 = vmatpush.bf16.msra.mxu2 %v305_v2  ;;  %v304_v7 = vld [vmem:[#allocation8] sm:$0xff]  ;;  %s234_s20 = sshll.u32 %s507_s19, 4  ;;  %s236_s21 = sshll.u32 %s621_s8, 4  ;;  %s235_s20 = int_to_ptr.vmem [resolvable:$true] %s234_s20  ;;  %s237_s21 = int_to_ptr.hbm [resolvable:$true] %s236_s21 }
  0x18   :  { %v97_v8 = vpack.c.bf16 %v96_v6, %v95_v5  ;;  %v317_v9 = vld [vmem:[%s617_s4] ss:$0 sm:$0xff]  ;;  %s506_s4 = smov [#allocation10]   ;;  %s508_s7 = smov [#allocation13]  }
  0x19   :  { %v318_v10 = vld [vmem:[%s618_s5] ss:$0 sm:$0xff]  ;;  %s221_s5 = sshll.u32 %s506_s4, 4  ;;  %s247_s22 = sshll.u32 %s508_s7, 4  ;;  %s222_s5 = int_to_ptr.vmem [resolvable:$true] %s221_s5  ;;  %s248_s22 = int_to_ptr.vmem [resolvable:$true] %s247_s22 }
  0x1a   :  { %129 = vmatpush.bf16.msra.mxu0 %v300_v3  ;;  %168 = vmatpush.bf16.msra.mxu1 %v302_v4  ;;  %v319_v17 = vld [vmem:[%s619_s6] ss:$0 sm:$0xff]  ;;  %s249_s25 = sshll.u32 %s622_s9, 4  ;;  %s250_s25 = int_to_ptr.hbm [resolvable:$true] %s249_s25 }
  0x1b   :  { %206 = vmatpush.bf16.msra.mxu2 %v304_v7 }
  0x1d   :  { %281 = vmatmul.msk.bf16.vlgmr.msra.gmra.mxu0 %vm118_vm0, %v97_v8  ;;  %290 = vmatmul.msk.bf16.vlgmr.msra.gmra.mxu1 %vm118_vm0, %v97_v8 }
  0x1e   :  { %299 = vmatmul.msk.bf16.vlgmr.msra.gmra.mxu2 %vm118_vm0, %v97_v8 }
  0x9a   :  { %v131_v11 = vpop.f32.mrf.mxu0  ;;  %v170_v12 = vpop.f32.mrf.mxu1 }
  0x9b   :  { %v132_v13 = vadd.f32 %v317_v9, %v131_v11  ;;  %v171_v14 = vadd.f32 %v318_v10, %v170_v12 }
  0x9d   :  { %v136_v15 = vpack.c.bf16 %v132_v13, %v132_v13  ;;  %v175_v16 = vpack.c.bf16 %v171_v14, %v171_v14 }
  0x9f   :  { %139 = vst.msk [vmem:[#allocation10] sm:$0xf] %vm138_vm1, %v136_v15 }
  0xa0   :  { %177 = vst.msk [vmem:[#allocation11] sm:$0xf] %vm138_vm1, %v175_v16 }
  0xa1   :  { %v208_v18 = vpop.f32.mrf.mxu2 }
  0xa2   :  { %v209_v19 = vadd.f32 %v319_v17, %v208_v18  ;;  %v133_v20 = vpop.f32.mrf.mxu0  ;;  %v172_v21 = vpop.f32.mrf.mxu1 }
  0xa3   :  { %v134_v22 = vadd.f32 %v317_v9, %v133_v20  ;;  %v173_v23 = vadd.f32 %v318_v10, %v172_v21 }
  0xa4   :  { %v213_v24 = vpack.c.bf16 %v209_v19, %v209_v19 }
  0xa5   :  { %v137_v25 = vpack.c.bf16 %v134_v22, %v134_v22  ;;  %v176_v26 = vpack.c.bf16 %v173_v23, %v173_v23 }
  0xa6   :  { %215 = vst.msk [vmem:[#allocation13] sm:$0xf] %vm138_vm1, %v213_v24 }
  0xa7   :  { %140 = vst.msk [vmem:[#allocation10 + $0x4] sm:$0xf] %vm138_vm1, %v137_v25 }
  0xa8   :  { %178 = vst.msk [vmem:[#allocation11 + $0x4] sm:$0xf] %vm138_vm1, %v176_v26  ;;  %229 = dma.vmem_to_hbm [thread:$0]  %s222_s5, 128, %s224_s16, [#allocation4], %s499_s17, %s499_s17, %s500_s18  }
  0xa9   :  { %v210_v27 = vpop.f32.mrf.mxu2  ;;  %242 = dma.vmem_to_hbm [thread:$0]  %s235_s20, 128, %s237_s21, [#allocation12], %s499_s17, %s499_s17, %s500_s18  }
  0xaa   :  { %v211_v28 = vadd.f32 %v319_v17, %v210_v27 }
  0xac   :  { %v214_v29 = vpack.c.bf16 %v211_v28, %v211_v28 }
  0xae   :  { %216 = vst.msk [vmem:[#allocation13 + $0x4] sm:$0xf] %vm138_vm1, %v214_v29 }
  0xaf   :  { %255 = dma.vmem_to_hbm [thread:$0]  %s248_s22, 128, %s250_s25, [#allocation12], %s499_s17, %s499_s17, %s500_s18  }
  0xb0   :  { %494 = dma.done.wait [#allocation4], 128  }
  0xb1   :  { %495 = vsyncadd [#allocation4], 4294967168 }
  0xb2   :  { %496 = dma.done.wait [#allocation12], 256  }
  0xb3   :  { %497 = vsyncadd [#allocation12], 4294967040 }
  0xb4   :  { %268 = vsyncpa [#allocation3], 1 }
  0xb5   :  { %269 = vsyncpa [#allocation6], 1 }
  0xb6   :  { %270 = vsyncpa [#allocation9], 1 }
  0xb7   :  { %271 = vsyncpa [#allocation4], 1 }
  0xb8   :  { %272 = vsyncpa [#allocation12], 1 }

</bundles_post_ra>
